<compile_context>
chip_gen: v5e
topology: v5e:2x2
jax: 0.10.0
libtpu: 0.0.40
codegen_flags: <defaults>
</compile_context>

<pallas_src>
import functools

import jax
import jax.numpy as jnp
from jax.experimental import pallas as pl
from jax.experimental.pallas import tpu as pltpu


_VMEM = pltpu.MemorySpace.VMEM
_SMEM = pltpu.MemorySpace.SMEM

ROW_TILE_TARGET = 512      # mem-bound kernels reach ~85% of HBM roofline at 512-1024 rows
ADJ_COL_TILE_TARGET = 1024  # big, lane-aligned DMAs on the dominant N^2 adjacency read


def _vmem_limit_bytes():
    """Per-generation scoped-VMEM budget: ~3/4 of per-core VMEM, capped at 96 MiB.

    v5e/v6e (128 MiB) -> 96 MiB; v7x (64 MiB per TC) -> 48 MiB; fallback 64 MiB.
    """
    cap = None
    try:
        info = pltpu.get_tpu_info()
        cap = getattr(info, "vmem_capacity_bytes", None)
    except Exception:
        cap = None
    if not cap:
        return 64 * 1024 * 1024
    return int(min(cap * 3 // 4, 96 * 1024 * 1024))


_VMEM_LIMIT = _vmem_limit_bytes()


# ---------------------------------------------------------------------------
# Tiling helpers (pad-to-tile; no divisor hunting, robust at real entity counts)
# ---------------------------------------------------------------------------
def _round_up(x, m):
    return ((x + m - 1) // m) * m


def _entity_tiles(n):
    """(tm, tk, n_pad): row tile, adjacency column tile, padded entity count."""
    tk = ADJ_COL_TILE_TARGET if n > ADJ_COL_TILE_TARGET else _round_up(n, 128)
    n_pad = _round_up(n, tk)            # multiple of 128 by construction
    tm = n_pad
    for t in (ROW_TILE_TARGET, 256, 128):
        if n_pad % t == 0:
            tm = t
            break
    return tm, tk, n_pad


def _row_block(n_rows):
    """Row tile for row-tiled (non-reduction) kernels; n_rows is pre-padded."""
    for t in (ROW_TILE_TARGET, 256, 128, 64, 32, 16, 8):
        if t <= n_rows and n_rows % t == 0:
            return t
    return n_rows


def _pad_rows(x, n_rows):
    if x.shape[0] == n_rows:
        return x
    return jnp.pad(x, ((0, n_rows - x.shape[0]), (0, 0)))


def _pad_cols(x, n_cols):
    if x.shape[1] == n_cols:
        return x
    return jnp.pad(x, ((0, 0), (0, n_cols - x.shape[1])))


# ---------------------------------------------------------------------------
# Fused GCN layer:  H = adj @ (X @ W) + b  (+ optional ReLU)
# ---------------------------------------------------------------------------
def _gcn_layer_kernel(adj_ref, x_ref, w_ref, b_ref, o_ref, acc_ref, *, tk, relu):
    k = pl.program_id(1)

    @pl.when(k == 0)
    def _():
        acc_ref[...] = jnp.zeros_like(acc_ref)

    # support tile for this k-block: X[k_block] @ W.  X and W are VMEM-resident,
    # so recomputing per row tile costs zero HBM traffic and ~din/tm extra MXU work
    # (and is safe if the parallel row axis is sharded across TensorCores).
    kk = pl.multiple_of(k * tk, tk)
    sup = jnp.dot(
        x_ref[pl.ds(kk, tk), :], w_ref[...], preferred_element_type=jnp.float32
    ).astype(adj_ref.dtype)
    acc_ref[...] += jnp.dot(adj_ref[...], sup, preferred_element_type=jnp.float32)

    @pl.when(k == pl.num_programs(1) - 1)
    def _():
        out = acc_ref[...] + b_ref[...]
        if relu:
            out = jnp.maximum(out, 0.0)
        o_ref[...] = out.astype(o_ref.dtype)


def gcn_layer(adj, x, w, b, *, relu, out_dtype):
    """adj: [N_pad, N_pad] (row-normalized, zero-padded); x: [N_pad, din]."""
    # TODO(synk): the real EVA adjacency is sparse; dense adj @ support (O(N^2)
    # HBM traffic) is used here.  A CSR/segment-sum kernel is the real fix.
    n_pad = adj.shape[0]
    din = x.shape[1]
    dout = w.shape[1]
    tm, tk, n_chk = _entity_tiles(n_pad)
    assert n_chk == n_pad, "adjacency must be pre-padded to the entity tile size"
    return pl.pallas_call(
        functools.partial(_gcn_layer_kernel, tk=tk, relu=relu),
        grid=(n_pad // tm, n_pad // tk),
        out_shape=jax.ShapeDtypeStruct((n_pad, dout), out_dtype),
        in_specs=[
            pl.BlockSpec((tm, tk), lambda i, k: (i, k)),
            pl.BlockSpec(memory_space=_VMEM),            # X, fully resident
            pl.BlockSpec(memory_space=_VMEM),            # W (din x dout), resident
            pl.BlockSpec(memory_space=_VMEM),            # bias, resident
        ],
        out_specs=pl.BlockSpec((tm, dout), lambda i, k: (i, 0)),
        scratch_shapes=[pltpu.VMEM((tm, dout), jnp.float32)],
        compiler_params=pltpu.CompilerParams(
            dimension_semantics=("parallel", "arbitrary"),
            vmem_limit_bytes=_VMEM_LIMIT,
        ),
    )(adj, x, w, b.reshape(1, -1).astype(jnp.float32))


# ---------------------------------------------------------------------------
# Fused per-view projections + F.normalize * softmax(w) + concat
# ---------------------------------------------------------------------------
def _fused_view_kernel(ws_ref, img_ref, att_ref, rel_ref, gph_ref,
                       wi_ref, wa_ref, wr_ref, b_ref, o_ref, *, d):
    # Three Linear projections (bf16 MXU, f32 acc) + per-view L2 normalize *
    # softmax weight + concat with normalized gph -> one lane-dense 4*d store.
    yi = jnp.dot(img_ref[...], wi_ref[...], preferred_element_type=jnp.float32) + b_ref[:, 0:d]
    ya = jnp.dot(att_ref[...], wa_ref[...], preferred_element_type=jnp.float32) + b_ref[:, d:2 * d]
    yr = jnp.dot(rel_ref[...], wr_ref[...], preferred_element_type=jnp.float32) + b_ref[:, 2 * d:3 * d]
    yg = gph_ref[...].astype(jnp.float32)

    def nrm(x, w):
        # F.normalize(x, dim=1) * w  with the PyTorch eps clamp (norm >= 1e-12)
        inv = jax.lax.rsqrt(jnp.maximum(jnp.sum(x * x, axis=1, keepdims=True), 1e-24))
        return (x * inv) * w

    o_ref[...] = jnp.concatenate(
        [nrm(yi, ws_ref[0, 0]), nrm(ya, ws_ref[0, 1]),
         nrm(yr, ws_ref[0, 2]), nrm(yg, ws_ref[0, 3])],
        axis=1,
    )


def fused_joint_emb(img_x, att_x, rel_x, gph, w_img_t, w_att_t, w_rel_t,
                    bias_cat, view_weights):
    # TODO(synk): on v6e/v7x the three N=32 projections could be folded into one
    # block-diagonal [K_total, 3*d] matmul for higher MXU lane occupancy.
    n_pad = img_x.shape[0]
    d = w_img_t.shape[1]
    tm = _row_block(n_pad)
    out_dim = 4 * d
    ws = view_weights.reshape(1, 4).astype(jnp.float32)
    return pl.pallas_call(
        functools.partial(_fused_view_kernel, d=d),
        grid=(n_pad // tm,),
        out_shape=jax.ShapeDtypeStruct((n_pad, out_dim), jnp.float32),
        in_specs=[
            pl.BlockSpec(memory_space=_SMEM),                              # view weights
            pl.BlockSpec((tm, img_x.shape[1]), lambda i: (i, 0)),
            pl.BlockSpec((tm, att_x.shape[1]), lambda i: (i, 0)),
            pl.BlockSpec((tm, rel_x.shape[1]), lambda i: (i, 0)),
            pl.BlockSpec((tm, gph.shape[1]), lambda i: (i, 0)),
            pl.BlockSpec(memory_space=_VMEM),                              # img_fc weight
            pl.BlockSpec(memory_space=_VMEM),                              # att_fc weight
            pl.BlockSpec(memory_space=_VMEM),                              # rel_fc weight
            pl.BlockSpec(memory_space=_VMEM),                              # concat bias
        ],
        out_specs=pl.BlockSpec((tm, out_dim), lambda i: (i, 0)),
        compiler_params=pltpu.CompilerParams(
            dimension_semantics=("parallel",), vmem_limit_bytes=_VMEM_LIMIT
        ),
    )(ws, img_x, att_x, rel_x, gph, w_img_t, w_att_t, w_rel_t, bias_cat)


# ---------------------------------------------------------------------------
# Row-wise L2 normalize (used once for img_embed = F.normalize(images_list))
# ---------------------------------------------------------------------------
def _l2norm_kernel(x_ref, o_ref):
    x = x_ref[...].astype(jnp.float32)
    inv = jax.lax.rsqrt(jnp.maximum(jnp.sum(x * x, axis=1, keepdims=True), 1e-24))
    o_ref[...] = (x * inv).astype(o_ref.dtype)


def l2_normalize_rows(x, out_dtype=jnp.float32):
    n, dcol = x.shape
    tm = _row_block(n)
    return pl.pallas_call(
        _l2norm_kernel,
        grid=(n // tm,),
        out_shape=jax.ShapeDtypeStruct((n, dcol), out_dtype),
        in_specs=[pl.BlockSpec((tm, dcol), lambda i: (i, 0))],
        out_specs=pl.BlockSpec((tm, dcol), lambda i: (i, 0)),
        compiler_params=pltpu.CompilerParams(
            dimension_semantics=("parallel",), vmem_limit_bytes=_VMEM_LIMIT
        ),
    )(x)


# ---------------------------------------------------------------------------
# NCA losses: one launch over 5 "views" (img, att, rel, gph, joint)
# ---------------------------------------------------------------------------
def _nca_kernel(alpha_ref, im_ref, s_ref, o_ref, *, d, beta, ep):
    # NCA loss (EVA): rows L2-normalized, sim = im @ s^T (cosine),
    # loss = mean_i [ log(1+sum_{j!=i} e^{a(s_ij-ep)})/a
    #               + log(1+sum_{j!=i} e^{a(s_ji-ep)})/a
    #               - log(1+b*relu(s_ii)) ]
    # Per-view slices of the joint rows are realized by a column mask (zeroing
    # the other views' columns changes neither norms nor dot products, and NCA
    # re-normalizes, so normalize(w_v*normalize(x)) == normalize(x)).
    v = pl.program_id(0)
    alpha = alpha_ref[0, v]
    full = im_ref.shape[1]

    col = jax.lax.broadcasted_iota(jnp.int32, (1, full), 1)
    in_view = (col >= v * d) & (col < (v + 1) * d)
    is_joint = v == (pl.num_programs(0) - 1)          # last view = full joint row
    sel = jnp.where(jnp.logical_or(is_joint, in_view), 1.0, 0.0)

    im = im_ref[...].astype(jnp.float32) * sel
    s = s_ref[...].astype(jnp.float32) * sel
    im_n = im * jax.lax.rsqrt(jnp.maximum(jnp.sum(im * im, axis=1, keepdims=True), 1e-24))
    s_n = s * jax.lax.rsqrt(jnp.maximum(jnp.sum(s * s, axis=1, keepdims=True), 1e-24))

    # im @ s^T without materializing a transpose (contract the last dims).
    sim = jax.lax.dot_general(
        im_n, s_n, (((1,), (1,)), ((), ())), preferred_element_type=jnp.float32
    )
    bsz = sim.shape[0]
    ri = jax.lax.broadcasted_iota(jnp.int32, (bsz, bsz), 0)
    ci = jax.lax.broadcasted_iota(jnp.int32, (bsz, bsz), 1)
    off_diag = ri != ci
    exp_off = jnp.where(off_diag, jnp.exp(alpha * (sim - ep)), 0.0)   # exact diag removal
    row_sum = jnp.sum(exp_off, axis=1)
    col_sum = jnp.sum(exp_off, axis=0)
    diag = jnp.sum(im_n * s_n, axis=1)                                # diag(sim) as row-dot

    total = (jnp.sum(jnp.log(1.0 + row_sum)) + jnp.sum(jnp.log(1.0 + col_sum))) / alpha
    total = total - jnp.sum(jnp.log(1.0 + beta * jnp.maximum(diag, 0.0)))
    o_ref[0, v] = total / bsz


def nca_losses_joint(im_rows, s_rows, alphas, *, d, beta, ep):
    """im_rows/s_rows: [B, 4*d] joint rows; alphas: [5] -> [5] losses, one launch."""
    # TODO(synk): at training-scale B (>~2k on v7x), tile sim flash-style over the
    # column axis instead of materializing the full [B,B] exp matrix in VMEM.
    v_cnt = alphas.shape[0]
    out = pl.pallas_call(
        functools.partial(_nca_kernel, d=d, beta=float(beta), ep=float(ep)),
        grid=(v_cnt,),
        out_shape=jax.ShapeDtypeStruct((1, v_cnt), jnp.float32),
        in_specs=[
            pl.BlockSpec(memory_space=_SMEM),      # per-view alphas
            pl.BlockSpec(memory_space=_VMEM),      # im rows, resident across views
            pl.BlockSpec(memory_space=_VMEM),      # s rows, resident across views
        ],
        out_specs=pl.BlockSpec(memory_space=_SMEM),
        compiler_params=pltpu.CompilerParams(
            dimension_semantics=("arbitrary",), vmem_limit_bytes=_VMEM_LIMIT
        ),
    )(alphas.reshape(1, v_cnt).astype(jnp.float32), im_rows, s_rows)
    return out[0]


# ---------------------------------------------------------------------------
# EVA forward (emb_generat + joint_emb_generat + NCA losses)
# ---------------------------------------------------------------------------
def eva_forward(params, data, batch):
    bf16 = jnp.bfloat16
    n_ent = data["ent_num"]
    n_pad = data["adj"].shape[0]

    # ---- emb_generat (no-noise / eval branch), fused GCN layers ----
    ent_emb = params["ent_embed"][data["input_idx"]].astype(bf16)   # lookup (glue)
    ent_emb = _pad_rows(ent_emb, n_pad)
    h1 = gcn_layer(data["adj"], ent_emb, params["gc1_w"].astype(bf16),
                   params["gc1_b"], relu=True, out_dtype=bf16)
    # TODO(synk): F.dropout between the GCN layers is identity here (eval mode).
    gph_emb = gcn_layer(data["adj"], h1, params["gc2_w"].astype(bf16),
                        params["gc2_b"], relu=False, out_dtype=jnp.float32)

    # ---- projections + joint_emb_generat, fused into one lane-dense kernel ----
    w_norm = jax.nn.softmax(params["weight_raw"])                   # 4 scalars (glue)
    bias_cat = jnp.concatenate(
        [params["img_fc_b"], params["att_fc_b"], params["rel_fc_b"]]
    ).reshape(1, -1).astype(jnp.float32)
    joint_full = fused_joint_emb(
        data["img_embed"], data["attr_embed"], data["rel_embed"], gph_emb,
        params["img_fc_w_t"].astype(bf16),
        params["att_fc_w_t"].astype(bf16),
        params["rel_fc_w_t"].astype(bf16),
        bias_cat, w_norm,
    )                                                               # [N_pad, 4*attr_dim]
    joint_emb = joint_full[:n_ent]

    # ---- NCA losses: one row gather + one grid=(5,) launch serves all five ----
    im_rows = joint_full[batch[:, 0]]                               # [B, 128] (glue gather)
    s_rows = joint_full[batch[:, 1]]
    d = joint_full.shape[1] // 4
    # column order is (img, att, rel, gph); criterion_gcn uses alpha=5, rest 15;
    # last entry is the joint (all columns) with alpha=15.
    alphas = jnp.array([15.0, 15.0, 15.0, 5.0, 15.0], jnp.float32)
    losses = nca_losses_joint(im_rows, s_rows, alphas, d=d, beta=10.0, ep=0.0)
    loss_img, loss_att, loss_rel, loss_gcn, loss_joi = (
        losses[0], losses[1], losses[2], losses[3], losses[4])

    loss_all = loss_joi + loss_att + loss_rel + loss_gcn + loss_img
    output = {
        "loss_dic": {
            "gcn": loss_gcn,
            "rel": loss_rel,
            "att": loss_att,
            "img": loss_img,
            "joi": loss_joi,
        },
        "emb": joint_emb,
        "weight": params["weight_raw"],
    }
    return loss_all, output


# ---------------------------------------------------------------------------
# Main: deterministic synthetic KG / args and one forward pass
# ---------------------------------------------------------------------------
if __name__ == "__main__":
    key = jax.random.PRNGKey(0)
    keys = jax.random.split(key, 12)

    # args: hidden_units="32,32,32", attr_dim=32, inner_view_num=4,
    #       w_name=w_char=False, add_noise=False
    ent_num = 16
    input_dim, hid_dim, out_dim = 32, 32, 32
    attr_dim = 32
    img_dim = 128
    rel_feat_dim = 1000        # rel_fc is hard-coded nn.Linear(1000, attr_dim)
    att_feat_dim = 64
    batch_size = 8

    def xavier(k, shape):
        fan_out, fan_in = shape
        std = (2.0 / (fan_in + fan_out)) ** 0.5
        return std * jax.random.normal(k, shape, jnp.float32)

    images_list = jax.random.normal(keys[0], (ent_num, img_dim), jnp.float32)
    rel_features = jax.random.normal(keys[1], (ent_num, rel_feat_dim), jnp.float32)
    att_features = jax.random.normal(keys[2], (ent_num, att_feat_dim), jnp.float32)

    # dense row-normalized adjacency with self loops (stands in for the sparse adj)
    eye = jnp.eye(ent_num, dtype=jnp.float32)
    ring = jnp.roll(eye, 1, axis=1) + jnp.roll(eye, -1, axis=1)
    a = eye + ring
    adj = a / jnp.sum(a, axis=1, keepdims=True)

    # entity-axis padding so every kernel sees tile-aligned shapes
    _, _, ent_pad = _entity_tiles(ent_num)
    adj_pad = jnp.zeros((ent_pad, ent_pad), jnp.float32).at[:ent_num, :ent_num].set(adj)

    # rel feature dim 1000 -> 1024 (lane aligned); zero padding is exact
    rel_in_pad = _round_up(rel_feat_dim, 128)

    params = {
        "weight_raw": jnp.ones((4,), jnp.float32),                    # inner_view_num = 4
        "ent_embed": xavier(keys[3], (ent_num, input_dim)),
        "gc1_w": xavier(keys[4], (input_dim, hid_dim)),
        "gc1_b": jnp.zeros((hid_dim,), jnp.float32),
        "gc2_w": xavier(keys[5], (hid_dim, out_dim)),
        "gc2_b": jnp.zeros((out_dim,), jnp.float32),
        # Linear weights are [out, in] in torch; store pre-transposed [in, out]
        "img_fc_w_t": xavier(keys[6], (attr_dim, img_dim)).T,
        "img_fc_b": jnp.zeros((attr_dim,), jnp.float32),
        "rel_fc_w_t": _pad_rows(xavier(keys[7], (attr_dim, rel_feat_dim)).T, rel_in_pad),
        "rel_fc_b": jnp.zeros((attr_dim,), jnp.float32),
        "att_fc_w_t": xavier(keys[8], (attr_dim, att_feat_dim)).T,
        "att_fc_b": jnp.zeros((attr_dim,), jnp.float32),
    }

    data = {
        "ent_num": ent_num,
        "input_idx": jnp.arange(ent_num, dtype=jnp.int32),
        # constant buffers pre-padded once and stored in bf16 (halves HBM traffic)
        # NOTE: bf16 adjacency / layer-1 activations (f32 accumulation) -- validate
        # tolerances against the f32 PyTorch reference.
        "adj": adj_pad.astype(jnp.bfloat16),
        # __init__ stores img_embed = F.normalize(images_list): done with the kernel
        "img_embed": l2_normalize_rows(_pad_rows(images_list, ent_pad),
                                       out_dtype=jnp.bfloat16),
        "rel_embed": _pad_cols(_pad_rows(rel_features, ent_pad), rel_in_pad).astype(jnp.bfloat16),
        "attr_embed": _pad_rows(att_features, ent_pad).astype(jnp.bfloat16),
    }

    # batch of alignment links: (left entity id, right entity id)
    batch = jnp.stack(
        [
            jnp.arange(batch_size, dtype=jnp.int32),
            jnp.arange(batch_size, dtype=jnp.int32) + batch_size,
        ],
        axis=1,
    )

    loss_all, output = eva_forward(params, data, batch)
    jax.block_until_ready((loss_all, output["emb"]))
    assert output["emb"].shape == (ent_num, attr_dim * 3 + out_dim)
    print("KERNEL_OK")
</pallas_src>

<mosaic_0001>
module attributes {stable_mosaic.version = 11 : i64} {
  func.func @_l2norm_kernel(%arg0: i32, %arg1: memref<128x128xf32, #tpu.memory_space<vmem>>, %arg2: memref<128x128xbf16, #tpu.memory_space<vmem>>) attributes {dimension_semantics = [#tpu.dimension_semantics<parallel>], iteration_bounds = array<i64: 1>, scalar_prefetch = 0 : i64, scratch_operands = 0 : i64, tpu.core_type = #tpu.core_type<tc>, window_params = [{transform_indices = @transform_0, window_bounds = array<i64: 128, 128>}, {transform_indices = @transform_1, window_bounds = array<i64: 128, 128>}]} {
    %c0 = arith.constant 0 : index
    %c0_0 = arith.constant 0 : index
    %0 = vector.load %arg1[%c0, %c0_0] : memref<128x128xf32, #tpu.memory_space<vmem>>, vector<128x128xf32>
    %1 = arith.mulf %0, %0 : vector<128x128xf32>
    %cst = arith.constant dense<0.000000e+00> : vector<128xf32>
    %2 = vector.multi_reduction <add>, %1, %cst [1] : vector<128x128xf32> to vector<128xf32>
    %3 = vector.shape_cast %2 : vector<128xf32> to vector<128x1xf32>
    %cst_1 = arith.constant 1.000000e-24 : f32
    %4 = vector.broadcast %cst_1 : f32 to vector<128x1xf32>
    %5 = arith.maximumf %3, %4 : vector<128x1xf32>
    %6 = math.rsqrt %5 : vector<128x1xf32>
    %7 = vector.broadcast %6 : vector<128x1xf32> to vector<128x128xf32>
    %8 = arith.mulf %0, %7 : vector<128x128xf32>
    %9 = arith.truncf %8 : vector<128x128xf32> to vector<128x128xbf16>
    %c0_2 = arith.constant 0 : index
    %c0_3 = arith.constant 0 : index
    %10 = vector.load %arg2[%c0_2, %c0_3] : memref<128x128xbf16, #tpu.memory_space<vmem>>, vector<128x128xbf16>
    tpu.vector_store %arg2[%c0_2, %c0_3], %9 {strides = array<i32>} : memref<128x128xbf16, #tpu.memory_space<vmem>>, vector<128x128xbf16>,
    return
  }
  func.func @transform_0(%arg0: i32) -> (i32, i32) {
    %c0_i32 = arith.constant 0 : i32
    %c0_i32_0 = arith.constant 0 : i32
    return %arg0, %c0_i32 : i32, i32
  }
  func.func @transform_1(%arg0: i32) -> (i32, i32) {
    %c0_i32 = arith.constant 0 : i32
    %c0_i32_0 = arith.constant 0 : i32
    return %arg0, %c0_i32 : i32, i32
  }
}

</mosaic_0001>

<bundles_post_ra>
// kernel: tpu_custom_call.1
= control target key start
LH: loop header
LB: loop body
LE: loop exit
PB: predicated region body
PF: predicated region fallthrough
CT: control target
= control target key end

     0   :  { %6 = vsyncpa [#allocation3], 0  ;;  %s784_s0 = inlined_call_operand.hbm [shape: f32[128,128], index: 0, kind: input, shape index: {}]   ;;  %s785_s1 = inlined_call_operand.hbm [shape: bf16[128,128], index: 1, kind: output, shape index: {}]  }
   0x1   :  { %7 = vsyncpa [#allocation4], 0  ;;  %s12_s8 = sshll.u32 %s784_s0, 4  ;;  %s469_s9 = smov [#allocation2]   ;;  %s13_s8 = int_to_ptr.hbm [resolvable:$true] %s12_s8 }
   0x2   :  { %s14_s10 = sshll.u32 %s469_s9, 4  ;;  %s470_s11 = smov 128   ;;  %s15_s10 = int_to_ptr.vmem [resolvable:$true] %s14_s10 }
   0x3   :  { %s471_s12 = smov 8  }
   0x4   :  { %20 = dma.hbm_to_vmem [thread:$0]  %s13_s8, 2048, %s15_s10, [#allocation3], %s470_s11, %s470_s11, %s471_s12  }
   0x5   :  { %465 = dma.done.wait [#allocation3], 2048  }
   0x6   :  { %466 = vsyncadd [#allocation3], 4294965248  ;;  %v488_v0 = vld [vmem:[#allocation2 + $0x20] sm:$0xff]  ;;  %v490_v1 = vld [vmem:[#allocation2 + $0x10] sm:$0xff]  ;;  %s472_s0 = smov [#allocation5]   ;;  %s319_s16 = sshll.u32 %s785_s1, 4  ;;  %s320_s16 = int_to_ptr.hbm [resolvable:$true] %s319_s16 }
   0x7   :  { %v492_v2 = vld [vmem:[#allocation2] sm:$0xff]  ;;  %v45_v3 = vmul.f32 %v488_v0, %v488_v0  ;;  %v43_v4 = vmul.f32 %v490_v1, %v490_v1  ;;  %v500_v6 = vld [vmem:[#allocation2 + $0x28] sm:$0xff]  ;;  %v502_v7 = vld [vmem:[#allocation2 + $0x18] sm:$0xff]  ;;  %s317_s13 = sshll.u32 %s472_s0, 4  ;;  %s473_s17 = smov 64   ;;  %s318_s13 = int_to_ptr.vmem [resolvable:$true] %s317_s13 }
   0x8   :  { %v41_v5 = vmul.f32 %v492_v2, %v492_v2  ;;  %v504_v8 = vld [vmem:[#allocation2 + $0x8] sm:$0xff]  ;;  %v46_v9 = vmul.f32 %v500_v6, %v500_v6  ;;  %v44_v10 = vmul.f32 %v502_v7, %v502_v7  ;;  %v512_v12 = vld [vmem:[#allocation2 + $0x40] sm:$0xff]  ;;  %v514_v13 = vld [vmem:[#allocation2 + $0x38] sm:$0xff]  ;;  %s474_s18 = smov 4  }
   0x9   :  { %65 = vadd.xlane.f32.xlu2 %v45_v3  ;;  %61 = vadd.xlane.f32.xlu1 %v43_v4  ;;  %v42_v11 = vmul.f32 %v504_v8, %v504_v8  ;;  %v516_v14 = vld [vmem:[#allocation2 + $0x30] sm:$0xff]  ;;  %v49_v15 = vmul.f32 %v512_v12, %v512_v12  ;;  %v48_v16 = vmul.f32 %v514_v13, %v514_v13  ;;  %v524_v18 = vld [vmem:[#allocation2 + $0x58] sm:$0xff]  ;;  %v528_v20 = vld [vmem:[#allocation2 + $0x48] sm:$0xff] }
   0xa   :  { %57 = vadd.xlane.f32.xlu0 %v41_v5  ;;  %v47_v17 = vmul.f32 %v516_v14, %v516_v14  ;;  %v526_v19 = vld [vmem:[#allocation2 + $0x50] sm:$0xff]  ;;  %v52_v21 = vmul.f32 %v524_v18, %v524_v18  ;;  %v50_v23 = vmul.f32 %v528_v20, %v528_v20  ;;  %v538_v25 = vld [vmem:[#allocation2 + $0x68] sm:$0xff]  ;;  %v540_v26 = vld [vmem:[#allocation2 + $0x60] sm:$0xff] }
   0xb   :  { %v51_v22 = vmul.f32 %v526_v19, %v526_v19  ;;  %v536_v24 = vld [vmem:[#allocation2 + $0x70] sm:$0xff]  ;;  %v54_v28 = vmul.f32 %v538_v25, %v538_v25  ;;  %v53_v29 = vmul.f32 %v540_v26, %v540_v26  ;;  %v548_v30 = vld [vmem:[#allocation2 + $0x78] sm:$0xff] }
   0xc   :  { %v55_v27 = vmul.f32 %v536_v24, %v536_v24  ;;  %v56_v31 = vmul.f32 %v548_v30, %v548_v30 }
  0x11   :  { %67 = vadd.xlane.f32.xlu2 %v46_v9  ;;  %63 = vadd.xlane.f32.xlu1 %v44_v10 }
  0x12   :  { %59 = vadd.xlane.f32.xlu0 %v42_v11 }
  0x19   :  { %73 = vadd.xlane.f32.xlu2 %v49_v15  ;;  %71 = vadd.xlane.f32.xlu1 %v48_v16 }
  0x1a   :  { %69 = vadd.xlane.f32.xlu0 %v47_v17 }
  0x21   :  { %79 = vadd.xlane.f32.xlu2 %v52_v21  ;;  %77 = vadd.xlane.f32.xlu1 %v51_v22 }
  0x22   :  { %75 = vadd.xlane.f32.xlu0 %v50_v23 }
  0x29   :  { %85 = vadd.xlane.f32.xlu2 %v55_v27  ;;  %83 = vadd.xlane.f32.xlu1 %v54_v28 }
  0x2a   :  { %81 = vadd.xlane.f32.xlu0 %v53_v29 }
  0x32   :  { %87 = vadd.xlane.f32.xlu0 %v56_v31 }
  0x7c   :  { %v66_v32 = vpop.xlane.xlu2 %65  ;;  %v62_v33 = vpop.xlane.xlu1 %61 }
  0x7d   :  { %v93_v34 = vmax.f32 %v66_v32, 1e-24  ;;  %v552_v35 = vmax.f32 %v62_v33, 1e-24  ;;  %v58_v36 = vpop.xlane.xlu0 %57 }
  0x7e   :  { %v554_v37 = vmax.f32 %v58_v36, 1e-24 }
  0x7f   :  { %385 = vrsqrt.f32 %v93_v34  ;;  %vm151_vm0 = vweird.f32 %v93_v34  ;;  %vm131_vm1 = vweird.f32 %v552_v35 }
  0x80   :  { %387 = vrsqrt.f32 %v552_v35  ;;  %vm111_vm3 = vweird.f32 %v554_v37 }
  0x81   :  { %389 = vrsqrt.f32 %v554_v37 }
  0x84   :  { %v68_v38 = vpop.xlane.xlu2 %67  ;;  %v64_v39 = vpop.xlane.xlu1 %63 }
  0x85   :  { %v558_v40 = vpop.eup %385  ;;  %v560_v41 = vmax.f32 %v68_v38, 1e-24  ;;  %v562_v42 = vmax.f32 %v64_v39, 1e-24  ;;  %v60_v43 = vpop.xlane.xlu0 %59 }
  0x86   :  { %v564_v44 = vpop.eup %387  ;;  %v146_v45 = vmul.f32 %v558_v40, %v93_v34  ;;  %v567_v46 = vmax.f32 %v60_v43, 1e-24  ;;  %vm152_vm2 = vweird.f32 %v558_v40 }
  0x87   :  { %v569_v47 = vpop.eup %389  ;;  %v126_v48 = vmul.f32 %v564_v44, %v552_v35  ;;  %391 = vrsqrt.f32 %v560_v41  ;;  %vm132_vm4 = vweird.f32 %v564_v44  ;;  %vm161_vm5 = vweird.f32 %v560_v41  ;;  %vm613_vm10 = vmor %vm151_vm0, %vm152_vm2 }
  0x88   :  { %v147_v49 = vmul.f32 %v558_v40, %v146_v45  ;;  %v106_v50 = vmul.f32 %v569_v47, %v554_v37  ;;  %393 = vrsqrt.f32 %v562_v42  ;;  %vm112_vm6 = vweird.f32 %v569_v47  ;;  %vm629_vm12 = vmor %vm131_vm1, %vm132_vm4 }
  0x89   :  { %v127_v51 = vmul.f32 %v564_v44, %v126_v48  ;;  %395 = vrsqrt.f32 %v567_v46  ;;  %vm141_vm7 = vweird.f32 %v562_v42  ;;  %vm121_vm8 = vweird.f32 %v567_v46  ;;  %vm644_vm13 = vmor %vm111_vm3, %vm112_vm6 }
  0x8a   :  { %v148_v52 = vmul.f32 0.5, %v147_v49  ;;  %v107_v53 = vmul.f32 %v569_v47, %v106_v50 }
  0x8b   :  { %v128_v54 = vmul.f32 0.5, %v127_v51 }
  0x8c   :  { %v108_v55 = vmul.f32 0.5, %v107_v53  ;;  %v74_v56 = vpop.xlane.xlu2 %73  ;;  %v72_v57 = vpop.xlane.xlu1 %71  ;;  %v149_v59 = vsub.f32 1.5, %v148_v52 }
  0x8d   :  { %v581_v58 = vpop.eup %391  ;;  %v584_v60 = vmax.f32 %v74_v56, 1e-24  ;;  %v70_v61 = vpop.xlane.xlu0 %69  ;;  %v129_v63 = vsub.f32 1.5, %v128_v54  ;;  %v595_v10 = vmax.f32 %v72_v57, 1e-24 }
  0x8e   :  { %v586_v62 = vpop.eup %393  ;;  %v156_v3 = vmul.f32 %v581_v58, %v560_v41  ;;  %v109_v5 = vsub.f32 1.5, %v108_v55  ;;  %v150_v16 = vmul.f32 %v558_v40, %v149_v59  ;;  %vm162_vm9 = vweird.f32 %v581_v58 }
  0x8f   :  { %v396_v4 = vpop.eup %395  ;;  %v136_v9 = vmul.f32 %v586_v62, %v562_v42  ;;  %397 = vrsqrt.f32 %v584_v60  ;;  %v130_v21 = vmul.f32 %v564_v44, %v129_v63  ;;  %vm142_vm11 = vweird.f32 %v586_v62  ;;  %vm163_vm15 = vmor %vm161_vm5, %vm162_vm9 }
  0x90   :  { %v157_v11 = vmul.f32 %v581_v58, %v156_v3  ;;  %v116_v15 = vmul.f32 %v396_v4, %v567_v46  ;;  %v110_v27 = vmul.f32 %v569_v47, %v109_v5  ;;  %399 = vrsqrt.f32 %v595_v10  ;;  %vm143_vm0 = vmor %vm141_vm7, %vm142_vm11 }
  0x91   :  { %v137_v17 = vmul.f32 %v586_v62, %v136_v9  ;;  %v618_v33 = vmax.f32 %v70_v61, 1e-24  ;;  %v154_v43 = vsel %vm613_vm10, %v558_v40, %v150_v16  ;;  %v134_v51 = vsel %vm629_vm12, %v564_v44, %v130_v21 }
  0x92   :  { %v158_v22 = vmul.f32 0.5, %v157_v11  ;;  %v117_v23 = vmul.f32 %v396_v4, %v116_v15  ;;  %vm122_vm14 = vweird.f32 %v396_v4  ;;  %v114_v53 = vsel %vm644_vm13, %v569_v47, %v110_v27 }
  0x93   :  { %v138_v28 = vmul.f32 0.5, %v137_v17  ;;  %401 = vrsqrt.f32 %v618_v33  ;;  %v269_v54 = vmul.f32 %v154_v43, %v488_v0  ;;  %v267_v56 = vmul.f32 %v134_v51, %v490_v1  ;;  %vm123_vm1 = vmor %vm121_vm8, %vm122_vm14 }
  0x94   :  { %v159_v31 = vsub.f32 1.5, %v158_v22  ;;  %v118_v32 = vmul.f32 0.5, %v117_v23  ;;  %v80_v36 = vpop.xlane.xlu2 %79  ;;  %v78_v38 = vpop.xlane.xlu1 %77  ;;  %v265_v0 = vmul.f32 %v114_v53, %v492_v2  ;;  %vm181_vm2 = vweird.f32 %v595_v10 }
  0x95   :  { %v620_v39 = vpop.eup %397  ;;  %v139_v45 = vsub.f32 1.5, %v138_v28  ;;  %v633_v48 = vmax.f32 %v80_v36, 1e-24  ;;  %v635_v49 = vmax.f32 %v78_v38, 1e-24  ;;  %v76_v50 = vpop.xlane.xlu0 %75  ;;  %vm171_vm3 = vweird.f32 %v618_v33 }
  0x96   :  { %v160_v40 = vmul.f32 %v581_v58, %v159_v31  ;;  %v119_v52 = vsub.f32 1.5, %v118_v32  ;;  %v186_v37 = vmul.f32 %v620_v39, %v584_v60  ;;  %v667_v41 = vpop.eup %399  ;;  %vm191_vm4 = vweird.f32 %v584_v60 }
  0x97   :  { %v140_v44 = vmul.f32 %v586_v62, %v139_v45  ;;  %403 = vrsqrt.f32 %v633_v48  ;;  %v176_v61 = vmul.f32 %v667_v41, %v595_v10  ;;  %vm192_vm5 = vweird.f32 %v620_v39 }
  0x98   :  { %v164_v55 = vsel %vm163_vm15, %v581_v58, %v160_v40  ;;  %v120_v47 = vmul.f32 %v396_v4, %v119_v52  ;;  %405 = vrsqrt.f32 %v635_v49  ;;  %vm182_vm6 = vweird.f32 %v667_v41 }
  0x99   :  { %v270_v57 = vmul.f32 %v164_v55, %v500_v6  ;;  %v144_v59 = vsel %vm143_vm0, %v586_v62, %v140_v44  ;;  %v187_v6 = vmul.f32 %v620_v39, %v186_v37  ;;  %v682_v62 = vmax.f32 %v76_v50, 1e-24  ;;  %v685_v9 = vpop.eup %401  ;;  %vm714_vm9 = vmor %vm181_vm2, %vm182_vm6 }
  0x9a   :  { %v268_v42 = vmul.f32 %v144_v59, %v502_v7  ;;  %v124_v58 = vsel %vm123_vm1, %v396_v4, %v120_v47  ;;  %v177_v46 = vmul.f32 %v667_v41, %v176_v61  ;;  %v166_v15 = vmul.f32 %v685_v9, %v618_v33  ;;  %vm756_vm1 = vmor %vm191_vm4, %vm192_vm5 }
  0x9b   :  { %v345_v63 = vpack.c.bf16 %v270_v57, %v269_v54  ;;  %v266_v1 = vmul.f32 %v124_v58, %v504_v8  ;;  %407 = vrsqrt.f32 %v682_v62  ;;  %v188_v21 = vmul.f32 0.5, %v187_v6 }
  0x9c   :  { %v340_v3 = vpack.c.bf16 %v268_v42, %v267_v56  ;;  %v86_v5 = vpop.xlane.xlu2 %85  ;;  %v178_v8 = vmul.f32 0.5, %v177_v46  ;;  %v84_v16 = vpop.xlane.xlu1 %83  ;;  %v167_v27 = vmul.f32 %v685_v9, %v166_v15  ;;  %vm221_vm7 = vweird.f32 %v633_v48 }
  0x9d   :  { %373 = vst [vmem:[#allocation5 + $0x10] sm:$0xff] %v345_v63   ;;  %v335_v2 = vpack.c.bf16 %v266_v1, %v265_v0  ;;  %v688_v7 = vmax.f32 %v86_v5, 1e-24  ;;  %v82_v4 = vpop.xlane.xlu0 %81  ;;  %v404_v11 = vpop.eup %403  ;;  %vm211_vm8 = vweird.f32 %v635_v49  ;;  %v706_v31 = vmax.f32 %v84_v16, 1e-24 }
  0x9e   :  { %372 = vst [vmem:[#allocation5 + $0x8] sm:$0xff] %v340_v3   ;;  %v693_v17 = vpop.eup %405  ;;  %v216_v22 = vmul.f32 %v404_v11, %v633_v48  ;;  %v179_v23 = vsub.f32 1.5, %v178_v8  ;;  %v168_v36 = vmul.f32 0.5, %v167_v27  ;;  %v710_v43 = vmax.f32 %v82_v4, 1e-24 }
  0x9f   :  { %336 = vst [vmem:[#allocation5] sm:$0xff] %v335_v2   ;;  %409 = vrsqrt.f32 %v688_v7  ;;  %v206_v28 = vmul.f32 %v693_v17, %v635_v49  ;;  %v189_v45 = vsub.f32 1.5, %v188_v21  ;;  %vm172_vm10 = vweird.f32 %v685_v9 }
  0xa0   :  { %v217_v29 = vmul.f32 %v404_v11, %v216_v22  ;;  %v180_v32 = vmul.f32 %v667_v41, %v179_v23  ;;  %411 = vrsqrt.f32 %v706_v31  ;;  %v169_v40 = vsub.f32 1.5, %v168_v36  ;;  %vm173_vm13 = vmor %vm171_vm3, %vm172_vm10 }
  0xa1   :  { %v207_v38 = vmul.f32 %v693_v17, %v206_v28  ;;  %v408_v34 = vpop.eup %407  ;;  %vm222_vm11 = vweird.f32 %v404_v11  ;;  %vm212_vm12 = vweird.f32 %v693_v17  ;;  %413 = vrsqrt.f32 %v710_v43 }
  0xa2   :  { %v218_v51 = vmul.f32 0.5, %v217_v29  ;;  %v184_v35 = vsel %vm714_vm9, %v667_v41, %v180_v32  ;;  %v196_v53 = vmul.f32 %v408_v34, %v682_v62  ;;  %v170_v54 = vmul.f32 %v685_v9, %v169_v40  ;;  %vm223_vm14 = vmor %vm221_vm7, %vm222_vm11 }
  0xa3   :  { %v208_v52 = vmul.f32 0.5, %v207_v38  ;;  %v190_v56 = vmul.f32 %v620_v39, %v189_v45  ;;  %v272_v57 = vmul.f32 %v184_v35, %v514_v13  ;;  %vm213_vm15 = vmor %vm211_vm8, %vm212_vm12  ;;  %vm202_vm0 = vweird.f32 %v408_v34 }
  0xa4   :  { %v219_v10 = vsub.f32 1.5, %v218_v51  ;;  %v197_v47 = vmul.f32 %v408_v34, %v196_v53  ;;  %v174_v42 = vsel %vm173_vm13, %v685_v9, %v170_v54  ;;  %vm201_vm2 = vweird.f32 %v682_v62 }
  0xa5   :  { %v724_v44 = vpop.eup %409  ;;  %v88_v37 = vpop.xlane.xlu0 %87  ;;  %v209_v55 = vsub.f32 1.5, %v208_v52  ;;  %v271_v13 = vmul.f32 %v174_v42, %v516_v14  ;;  %v194_v9 = vsel %vm756_vm1, %v620_v39, %v190_v56  ;;  %vm203_vm3 = vmor %vm201_vm2, %vm202_vm0  ;;  %vm241_vm4 = vweird.f32 %v706_v31 }
  0xa6   :  { %v246_v41 = vmul.f32 %v724_v44, %v688_v7  ;;  %v220_v59 = vmul.f32 %v404_v11, %v219_v10  ;;  %v737_v0 = vmax.f32 %v88_v37, 1e-24  ;;  %v198_v61 = vmul.f32 0.5, %v197_v47  ;;  %v412_v1 = vpop.eup %411 }
  0xa7   :  { %v210_v58 = vmul.f32 %v693_v17, %v209_v55  ;;  %v414_v46 = vpop.eup %413  ;;  %v350_v5 = vpack.c.bf16 %v272_v57, %v271_v13  ;;  %vm242_vm5 = vweird.f32 %v412_v1  ;;  %vm251_vm7 = vweird.f32 %v688_v7 }
  0xa8   :  { %v247_v63 = vmul.f32 %v724_v44, %v246_v41  ;;  %v224_v6 = vsel %vm223_vm14, %v404_v11, %v220_v59  ;;  %415 = vrsqrt.f32 %v737_v0  ;;  %v199_v3 = vsub.f32 1.5, %v198_v61  ;;  %vm243_vm9 = vmor %vm241_vm4, %vm242_vm5 }
  0xa9   :  { %v276_v33 = vmul.f32 %v224_v6, %v524_v18  ;;  %v214_v48 = vsel %vm213_vm15, %v693_v17, %v210_v58  ;;  %v236_v18 = vmul.f32 %v412_v1, %v706_v31  ;;  %v226_v11 = vmul.f32 %v414_v46, %v710_v43  ;;  %374 = vst [vmem:[#allocation5 + $0x18] sm:$0xff] %v350_v5  }
  0xaa   :  { %v275_v49 = vmul.f32 %v214_v48, %v526_v19  ;;  %v200_v2 = vmul.f32 %v408_v34, %v199_v3  ;;  %v248_v4 = vmul.f32 0.5, %v247_v63  ;;  %v273_v19 = vmul.f32 %v194_v9, %v512_v12 }
  0xab   :  { %v237_v8 = vmul.f32 %v412_v1, %v236_v18  ;;  %v227_v16 = vmul.f32 %v414_v46, %v226_v11  ;;  %vm232_vm6 = vweird.f32 %v414_v46  ;;  %vm252_vm8 = vweird.f32 %v724_v44 }
  0xac   :  { %v360_v60 = vpack.c.bf16 %v276_v33, %v275_v49  ;;  %v204_v15 = vsel %vm203_vm3, %v408_v34, %v200_v2  ;;  %v249_v22 = vsub.f32 1.5, %v248_v4  ;;  %vm231_vm10 = vweird.f32 %v710_v43  ;;  %vm253_vm13 = vmor %vm251_vm7, %vm252_vm8 }
  0xad   :  { %v274_v62 = vmul.f32 %v204_v15, %v528_v20  ;;  %v238_v21 = vmul.f32 0.5, %v237_v8  ;;  %v228_v23 = vmul.f32 0.5, %v227_v16  ;;  %vm233_vm11 = vmor %vm231_vm10, %vm232_vm6  ;;  %vm261_vm14 = vweird.f32 %v737_v0 }
  0xae   :  { %v416_v17 = vpop.eup %415  ;;  %376 = vst [vmem:[#allocation5 + $0x28] sm:$0xff] %v360_v60   ;;  %v250_v20 = vmul.f32 %v724_v44, %v249_v22 }
  0xaf   :  { %v256_v39 = vmul.f32 %v416_v17, %v737_v0  ;;  %v355_v27 = vpack.c.bf16 %v274_v62, %v273_v19  ;;  %v239_v28 = vsub.f32 1.5, %v238_v21  ;;  %v229_v29 = vsub.f32 1.5, %v228_v23 }
  0xb0   :  { %vm262_vm12 = vweird.f32 %v416_v17  ;;  %v254_v51 = vsel %vm253_vm13, %v724_v44, %v250_v20 }
  0xb1   :  { %v257_v32 = vmul.f32 %v416_v17, %v256_v39  ;;  %375 = vst [vmem:[#allocation5 + $0x20] sm:$0xff] %v355_v27   ;;  %v240_v12 = vmul.f32 %v412_v1, %v239_v28  ;;  %v230_v36 = vmul.f32 %v414_v46, %v229_v29  ;;  %vm263_vm15 = vmor %vm261_vm14, %vm262_vm12  ;;  %v279_v43 = vmul.f32 %v254_v51, %v536_v24 }
  0xb3   :  { %v258_v38 = vmul.f32 0.5, %v257_v32  ;;  %v244_v34 = vsel %vm243_vm9, %v412_v1, %v240_v12  ;;  %v234_v45 = vsel %vm233_vm11, %v414_v46, %v230_v36 }
  0xb4   :  { %v278_v31 = vmul.f32 %v244_v34, %v538_v25  ;;  %v277_v7 = vmul.f32 %v234_v45, %v540_v26 }
  0xb5   :  { %v259_v50 = vsub.f32 1.5, %v258_v38 }
  0xb6   :  { %v365_v40 = vpack.c.bf16 %v278_v31, %v277_v7 }
  0xb7   :  { %v260_v35 = vmul.f32 %v416_v17, %v259_v50 }
  0xb8   :  { %377 = vst [vmem:[#allocation5 + $0x30] sm:$0xff] %v365_v40  }
  0xb9   :  { %v264_v25 = vsel %vm263_vm15, %v416_v17, %v260_v35 }
  0xba   :  { %v280_v52 = vmul.f32 %v264_v25, %v548_v30 }
  0xbc   :  { %v370_v26 = vpack.c.bf16 %v280_v52, %v279_v43 }
  0xbe   :  { %378 = vst [vmem:[#allocation5 + $0x38] sm:$0xff] %v370_v26  }
  0xbf   :  { %325 = dma.vmem_to_hbm [thread:$0]  %s318_s13, 1024, %s320_s16, [#allocation4], %s473_s17, %s473_s17, %s474_s18  }
  0xc0   :  { %467 = dma.done.wait [#allocation4], 1024  }
  0xc1   :  { %468 = vsyncadd [#allocation4], 4294966272 }
  0xc2   :  { %330 = vsyncpa [#allocation3], 1 }
  0xc3   :  { %331 = vsyncpa [#allocation4], 1 }

</bundles_post_ra>
